<compile_context>
chip_gen: v6e
topology: v6e:2x2x1
jax: 0.10.0
libtpu: 0.0.40
codegen_flags: <defaults>
</compile_context>

<pallas_src>
import jax
import jax.numpy as jnp
import numpy as np
from jax.experimental import pallas as pl
from jax.experimental.pallas import tpu as pltpu

_LANE_ALIGN = 128               # lane (last-dim) alignment for MXU / unmasked vst
_ROW_ALIGN = 16                 # sublane alignment (covers bf16 packing too)
_OPERATOR_DTYPE = jnp.bfloat16  # dtype of the big neighborhood-operator matmuls


def _round_up(n, m):
    return ((n + m - 1) // m) * m


def _pad2(a, rows, cols, dtype=None):
    r, c = a.shape
    out = jnp.pad(a, ((0, rows - r), (0, cols - c)))
    return out if dtype is None else out.astype(dtype)


# ----------------------------------------------------------------------------
# Pallas kernel: the full n_layers SCConv stack (grid axis = layer, "arbitrary")
# ----------------------------------------------------------------------------
def scconv_stack_kernel(
    x0_ref, x1_ref, x2_ref,           # padded input features (read on layer 0)
    opn_ref, ope_ref, opf_ref,        # concatenated neighborhood operators
    wn_ref, we_ref, wf_ref,           # fused per-layer weights (by source rank)
    out0_ref, out1_ref, out2_ref,     # outputs; VMEM-resident layer carry
):
    f32 = jnp.float32
    op_dt = opn_ref.dtype
    c0p = out0_ref.shape[-1]
    c1p = out1_ref.shape[-1]
    c2p = out2_ref.shape[-1]

    # Output blocks have a constant block index -> same VMEM buffer every layer.
    # Use them as the layer-to-layer carry (no scratch needed).
    @pl.when(pl.program_id(0) == 0)
    def _init():
        out0_ref[...] = x0_ref[...]
        out1_ref[...] = x1_ref[...]
        out2_ref[...] = x2_ref[...]

    x0 = out0_ref[...]
    x1 = out1_ref[...]
    x2 = out2_ref[...]

    # One projection dot per SOURCE rank (weights fused along output lanes),
    # f32 accumulation, then cast once for the operator dots.
    p0 = jnp.dot(x0, wn_ref[...], preferred_element_type=f32).astype(op_dt)  # (np_, c0p+c1p)
    p1 = jnp.dot(x1, we_ref[...], preferred_element_type=f32).astype(op_dt)  # (ep_, c0p+c1p+c2p)
    p2 = jnp.dot(x2, wf_ref[...], preferred_element_type=f32).astype(op_dt)  # (fp_, c1p+c2p)

    # Lane-aligned (multiple of 128) static slices back out of the fused dots.
    m00, m01 = p0[:, :c0p], p0[:, c0p:]
    m10, m11, m12 = p1[:, :c0p], p1[:, c0p:c0p + c1p], p1[:, c0p + c1p:]
    m21, m22 = p2[:, :c1p], p2[:, c1p:]

    # One fused operator dot per TARGET rank: operators were concatenated along
    # the contraction axis in the wrapper; row-stack the matching projections.
    y0 = jnp.dot(opn_ref[...], jnp.concatenate([m00, m10], axis=0),
                 preferred_element_type=f32)
    y1 = jnp.dot(ope_ref[...], jnp.concatenate([m11, m01, m21], axis=0),
                 preferred_element_type=f32)
    y2 = jnp.dot(opf_ref[...], jnp.concatenate([m22, m12], axis=0),
                 preferred_element_type=f32)

    # sigmoid(y) = 1 / (1 + exp(-y)) : exp + approx reciprocal, both on the EUP.
    out0_ref[...] = pl.reciprocal(1.0 + jnp.exp(-y0), approx=True)
    out1_ref[...] = pl.reciprocal(1.0 + jnp.exp(-y1), approx=True)
    out2_ref[...] = pl.reciprocal(1.0 + jnp.exp(-y2), approx=True)


# ----------------------------------------------------------------------------
# Wrapper: one fused pallas_call for the whole SCConv stack
# ----------------------------------------------------------------------------
def scconv_forward(params, x0, x1, x2, b1, b1n, b2, b2n, aup0, aup1, adn1, adn2):
    """Full SCConv forward (n_layers = len(params)) as a single fused Pallas call."""
    n_layers = len(params)
    n_nodes, c0 = x0.shape
    n_edges, c1 = x1.shape
    n_faces, c2 = x2.shape

    np_, ep_, fp_ = (_round_up(n, _ROW_ALIGN) for n in (n_nodes, n_edges, n_faces))
    c0p, c1p, c2p = (_round_up(c, _LANE_ALIGN) for c in (c0, c1, c2))

    # --- layer-invariant preprocessing, hoisted out of the layer loop --------
    op_dt = _OPERATOR_DTYPE
    op_node = jnp.concatenate(
        [_pad2(aup0, np_, np_), _pad2(b1n, np_, ep_)], axis=1).astype(op_dt)
    op_edge = jnp.concatenate(
        [_pad2(aup1 + adn1, ep_, ep_), _pad2(b1.T, ep_, np_),
         _pad2(b2n, ep_, fp_)], axis=1).astype(op_dt)
    op_face = jnp.concatenate(
        [_pad2(adn2, fp_, fp_), _pad2(b2.T, fp_, ep_)], axis=1).astype(op_dt)

    x0_p = _pad2(x0.astype(jnp.float32), np_, c0p)
    x1_p = _pad2(x1.astype(jnp.float32), ep_, c1p)
    x2_p = _pad2(x2.astype(jnp.float32), fp_, c2p)

    # --- per-layer weights: fuse by SOURCE rank (one matrix per input rank) ---
    # params[l] = (W00, W10, W01, W11, W21, W12, W22)
    def fuse_weights(layer_w):
        w00, w10, w01, w11, w21, w12, w22 = (jnp.asarray(w, jnp.float32)
                                             for w in layer_w)
        wn = jnp.concatenate([_pad2(w00, c0p, c0p), _pad2(w01, c0p, c1p)], axis=1)
        we = jnp.concatenate([_pad2(w10, c1p, c0p), _pad2(w11, c1p, c1p),
                              _pad2(w12, c1p, c2p)], axis=1)
        wf = jnp.concatenate([_pad2(w21, c2p, c1p), _pad2(w22, c2p, c2p)], axis=1)
        return wn, we, wf

    fused = [fuse_weights(lw) for lw in params]
    wn_stack = jnp.stack([f[0] for f in fused])   # (L, c0p, c0p+c1p)
    we_stack = jnp.stack([f[1] for f in fused])   # (L, c1p, c0p+c1p+c2p)
    wf_stack = jnp.stack([f[2] for f in fused])   # (L, c2p, c1p+c2p)

    def resident(shape):
        # Constant block index every layer -> DMA'd once, VMEM-resident.
        return pl.BlockSpec(shape, lambda l: (0, 0))

    def per_layer(arr):
        # Per-layer weight slice; leading layer axis squeezed away.
        _, r, c = arr.shape
        return pl.BlockSpec((None, r, c), lambda l: (l, 0, 0))

    in_specs = [
        resident(x0_p.shape), resident(x1_p.shape), resident(x2_p.shape),
        resident(op_node.shape), resident(op_edge.shape), resident(op_face.shape),
        per_layer(wn_stack), per_layer(we_stack), per_layer(wf_stack),
    ]
    out_specs = (resident((np_, c0p)), resident((ep_, c1p)), resident((fp_, c2p)))

    out0, out1, out2 = pl.pallas_call(
        scconv_stack_kernel,
        grid=(n_layers,),
        in_specs=in_specs,
        out_specs=out_specs,
        out_shape=(
            jax.ShapeDtypeStruct((np_, c0p), jnp.float32),
            jax.ShapeDtypeStruct((ep_, c1p), jnp.float32),
            jax.ShapeDtypeStruct((fp_, c2p), jnp.float32),
        ),
        compiler_params=pltpu.CompilerParams(
            dimension_semantics=("arbitrary",),
            vmem_limit_bytes=64 * 1024 * 1024,
        ),
    )(x0_p, x1_p, x2_p, op_node, op_edge, op_face, wn_stack, we_stack, wf_stack)

    return out0[:n_nodes, :c0], out1[:n_edges, :c1], out2[:n_faces, :c2]


# ----------------------------------------------------------------------------
# Pure-JAX reference (original f32 semantics) for the correctness check
# ----------------------------------------------------------------------------
def scconv_forward_ref(params, x0, x1, x2, b1, b1n, b2, b2n, aup0, aup1, adn1, adn2):
    sig = lambda y: 1.0 / (1.0 + jnp.exp(-y))
    for (w00, w10, w01, w11, w21, w12, w22) in params:
        y0 = aup0 @ (x0 @ w00) + b1n @ (x1 @ w10)
        y1 = (aup1 + adn1) @ (x1 @ w11) + b1.T @ (x0 @ w01) + b2n @ (x2 @ w21)
        y2 = adn2 @ (x2 @ w22) + b2.T @ (x1 @ w12)
        x0, x1, x2 = sig(y0), sig(y1), sig(y2)
    return x0, x1, x2


def xavier_uniform(key, shape):
    fan_in, fan_out = shape
    limit = float(np.sqrt(6.0 / (fan_in + fan_out)))
    return jax.random.uniform(key, shape, jnp.float32, -limit, limit)


def init_scconv_params(key, node_c, edge_c, face_c, n_layers):
    """Deterministic xavier-uniform init of all Conv weights (7 per layer)."""
    params = []
    shapes = [
        (node_c, node_c),  # W00 conv_0_to_0
        (edge_c, node_c),  # W10 conv_1_to_0
        (node_c, edge_c),  # W01 conv_0_to_1
        (edge_c, edge_c),  # W11 conv_1_to_1
        (face_c, edge_c),  # W21 conv_2_to_1
        (edge_c, face_c),  # W12 conv_1_to_2
        (face_c, face_c),  # W22 conv_2_to_2
    ]
    for _ in range(n_layers):
        keys = jax.random.split(key, len(shapes) + 1)
        key = keys[0]
        params.append(tuple(xavier_uniform(k, s) for k, s in zip(keys[1:], shapes)))
    return params


if __name__ == "__main__":
    key = jax.random.PRNGKey(0)

    # Small synthetic simplicial complex.
    n_nodes, n_edges, n_faces = 16, 32, 8
    node_c = edge_c = face_c = 8
    n_layers = 2

    ks = jax.random.split(key, 16)
    x_0 = jax.random.normal(ks[0], (n_nodes, node_c), jnp.float32)
    x_1 = jax.random.normal(ks[1], (n_edges, edge_c), jnp.float32)
    x_2 = jax.random.normal(ks[2], (n_faces, face_c), jnp.float32)

    incidence_1 = jax.random.normal(ks[3], (n_nodes, n_edges), jnp.float32) * 0.3
    incidence_1_norm = jax.random.normal(ks[4], (n_nodes, n_edges), jnp.float32) * 0.3
    incidence_2 = jax.random.normal(ks[5], (n_edges, n_faces), jnp.float32) * 0.3
    incidence_2_norm = jax.random.normal(ks[6], (n_edges, n_faces), jnp.float32) * 0.3
    adjacency_up_0_norm = jax.random.normal(ks[7], (n_nodes, n_nodes), jnp.float32) * 0.3
    adjacency_up_1_norm = jax.random.normal(ks[8], (n_edges, n_edges), jnp.float32) * 0.3
    adjacency_down_1_norm = jax.random.normal(ks[9], (n_edges, n_edges), jnp.float32) * 0.3
    adjacency_down_2_norm = jax.random.normal(ks[10], (n_faces, n_faces), jnp.float32) * 0.3

    params = init_scconv_params(jax.random.PRNGKey(42), node_c, edge_c, face_c, n_layers)

    fwd = jax.jit(scconv_forward)
    out = fwd(
        params, x_0, x_1, x_2,
        incidence_1, incidence_1_norm, incidence_2, incidence_2_norm,
        adjacency_up_0_norm, adjacency_up_1_norm,
        adjacency_down_1_norm, adjacency_down_2_norm,
    )
    out = jax.block_until_ready(out)

    ref = scconv_forward_ref(
        params, x_0, x_1, x_2,
        incidence_1, incidence_1_norm, incidence_2, incidence_2_norm,
        adjacency_up_0_norm, adjacency_up_1_norm,
        adjacency_down_1_norm, adjacency_down_2_norm,
    )

    # bf16 operator matmuls (f32 accumulation) + approx reciprocal in the kernel:
    # compare against the f32 reference with a correspondingly loosened tolerance.
    for o, r in zip(out, ref):
        np.testing.assert_allclose(np.asarray(o), np.asarray(r), rtol=2e-2, atol=2e-2)

    print("KERNEL_OK")
</pallas_src>

<mosaic_0001>
module attributes {stable_mosaic.version = 11 : i64} {
  func.func @scconv_stack_kernel(%arg0: i32, %arg1: memref<16x128xf32, #tpu.memory_space<vmem>>, %arg2: memref<32x128xf32, #tpu.memory_space<vmem>>, %arg3: memref<16x128xf32, #tpu.memory_space<vmem>>, %arg4: memref<16x48xbf16, #tpu.memory_space<vmem>>, %arg5: memref<32x64xbf16, #tpu.memory_space<vmem>>, %arg6: memref<16x48xbf16, #tpu.memory_space<vmem>>, %arg7: memref<1x128x256xf32, #tpu.memory_space<vmem>>, %arg8: memref<1x128x384xf32, #tpu.memory_space<vmem>>, %arg9: memref<1x128x256xf32, #tpu.memory_space<vmem>>, %arg10: memref<16x128xf32, #tpu.memory_space<vmem>>, %arg11: memref<32x128xf32, #tpu.memory_space<vmem>>, %arg12: memref<16x128xf32, #tpu.memory_space<vmem>>) attributes {dimension_semantics = [#tpu.dimension_semantics<arbitrary>], iteration_bounds = array<i64: 2>, scalar_prefetch = 0 : i64, scratch_operands = 0 : i64, tpu.core_type = #tpu.core_type<tc>, window_params = [{pipeline_mode = #tpu.pipeline_mode<synchronous>, transform_indices = @transform_0, window_bounds = array<i64: 16, 128>}, {pipeline_mode = #tpu.pipeline_mode<synchronous>, transform_indices = @transform_1, window_bounds = array<i64: 32, 128>}, {pipeline_mode = #tpu.pipeline_mode<synchronous>, transform_indices = @transform_2, window_bounds = array<i64: 16, 128>}, {pipeline_mode = #tpu.pipeline_mode<synchronous>, transform_indices = @transform_3, window_bounds = array<i64: 16, 48>}, {pipeline_mode = #tpu.pipeline_mode<synchronous>, transform_indices = @transform_4, window_bounds = array<i64: 32, 64>}, {pipeline_mode = #tpu.pipeline_mode<synchronous>, transform_indices = @transform_5, window_bounds = array<i64: 16, 48>}, {transform_indices = @transform_6, window_bounds = array<i64: 1, 128, 256>}, {transform_indices = @transform_7, window_bounds = array<i64: 1, 128, 384>}, {transform_indices = @transform_8, window_bounds = array<i64: 1, 128, 256>}, {pipeline_mode = #tpu.pipeline_mode<synchronous>, transform_indices = @transform_9, window_bounds = array<i64: 16, 128>}, {pipeline_mode = #tpu.pipeline_mode<synchronous>, transform_indices = @transform_10, window_bounds = array<i64: 32, 128>}, {pipeline_mode = #tpu.pipeline_mode<synchronous>, transform_indices = @transform_11, window_bounds = array<i64: 16, 128>}]} {
    %c0_i32 = arith.constant 0 : i32
    %0 = arith.cmpi eq, %arg0, %c0_i32 : i32
    %1 = arith.extui %0 : i1 to i32
    %c0_i32_0 = arith.constant 0 : i32
    %2 = arith.cmpi ne, %1, %c0_i32_0 : i32
    scf.if %2 {
      %c0_38 = arith.constant 0 : index
      %c0_39 = arith.constant 0 : index
      %55 = vector.load %arg1[%c0_38, %c0_39] : memref<16x128xf32, #tpu.memory_space<vmem>>, vector<16x128xf32>
      %c0_40 = arith.constant 0 : index
      %c0_41 = arith.constant 0 : index
      %56 = vector.load %arg10[%c0_40, %c0_41] : memref<16x128xf32, #tpu.memory_space<vmem>>, vector<16x128xf32>
      tpu.vector_store %arg10[%c0_40, %c0_41], %55 {strides = array<i32>} : memref<16x128xf32, #tpu.memory_space<vmem>>, vector<16x128xf32>,
      %c0_42 = arith.constant 0 : index
      %c0_43 = arith.constant 0 : index
      %57 = vector.load %arg2[%c0_42, %c0_43] : memref<32x128xf32, #tpu.memory_space<vmem>>, vector<32x128xf32>
      %c0_44 = arith.constant 0 : index
      %c0_45 = arith.constant 0 : index
      %58 = vector.load %arg11[%c0_44, %c0_45] : memref<32x128xf32, #tpu.memory_space<vmem>>, vector<32x128xf32>
      tpu.vector_store %arg11[%c0_44, %c0_45], %57 {strides = array<i32>} : memref<32x128xf32, #tpu.memory_space<vmem>>, vector<32x128xf32>,
      %c0_46 = arith.constant 0 : index
      %c0_47 = arith.constant 0 : index
      %59 = vector.load %arg3[%c0_46, %c0_47] : memref<16x128xf32, #tpu.memory_space<vmem>>, vector<16x128xf32>
      %c0_48 = arith.constant 0 : index
      %c0_49 = arith.constant 0 : index
      %60 = vector.load %arg12[%c0_48, %c0_49] : memref<16x128xf32, #tpu.memory_space<vmem>>, vector<16x128xf32>
      tpu.vector_store %arg12[%c0_48, %c0_49], %59 {strides = array<i32>} : memref<16x128xf32, #tpu.memory_space<vmem>>, vector<16x128xf32>,
    } else {
    }
    %c0 = arith.constant 0 : index
    %c0_1 = arith.constant 0 : index
    %3 = vector.load %arg10[%c0, %c0_1] : memref<16x128xf32, #tpu.memory_space<vmem>>, vector<16x128xf32>
    %c0_2 = arith.constant 0 : index
    %c0_3 = arith.constant 0 : index
    %4 = vector.load %arg11[%c0_2, %c0_3] : memref<32x128xf32, #tpu.memory_space<vmem>>, vector<32x128xf32>
    %c0_4 = arith.constant 0 : index
    %c0_5 = arith.constant 0 : index
    %5 = vector.load %arg12[%c0_4, %c0_5] : memref<16x128xf32, #tpu.memory_space<vmem>>, vector<16x128xf32>
    %c0_6 = arith.constant 0 : index
    %c0_7 = arith.constant 0 : index
    %c0_8 = arith.constant 0 : index
    %6 = vector.load %arg7[%c0_6, %c0_7, %c0_8] : memref<1x128x256xf32, #tpu.memory_space<vmem>>, vector<1x128x256xf32>
    %7 = vector.shape_cast %6 : vector<1x128x256xf32> to vector<128x256xf32>
    %cst = arith.constant dense<0.000000e+00> : vector<16x256xf32>
    %8 = tpu.matmul %3, %7, %cst {dimension_numbers = #tpu.dot_dimension_numbers<[1], [0], [0], [1], [0, 0, 1, 1], [], []>} : vector<16x128xf32>, vector<128x256xf32>, vector<16x256xf32> -> vector<16x256xf32>
    %9 = arith.truncf %8 : vector<16x256xf32> to vector<16x256xbf16>
    %c0_9 = arith.constant 0 : index
    %c0_10 = arith.constant 0 : index
    %c0_11 = arith.constant 0 : index
    %10 = vector.load %arg8[%c0_9, %c0_10, %c0_11] : memref<1x128x384xf32, #tpu.memory_space<vmem>>, vector<1x128x384xf32>
    %11 = vector.shape_cast %10 : vector<1x128x384xf32> to vector<128x384xf32>
    %cst_12 = arith.constant dense<0.000000e+00> : vector<32x384xf32>
    %12 = tpu.matmul %4, %11, %cst_12 {dimension_numbers = #tpu.dot_dimension_numbers<[1], [0], [0], [1], [0, 0, 1, 1], [], []>} : vector<32x128xf32>, vector<128x384xf32>, vector<32x384xf32> -> vector<32x384xf32>
    %13 = arith.truncf %12 : vector<32x384xf32> to vector<32x384xbf16>
    %c0_13 = arith.constant 0 : index
    %c0_14 = arith.constant 0 : index
    %c0_15 = arith.constant 0 : index
    %14 = vector.load %arg9[%c0_13, %c0_14, %c0_15] : memref<1x128x256xf32, #tpu.memory_space<vmem>>, vector<1x128x256xf32>
    %15 = vector.shape_cast %14 : vector<1x128x256xf32> to vector<128x256xf32>
    %cst_16 = arith.constant dense<0.000000e+00> : vector<16x256xf32>
    %16 = tpu.matmul %5, %15, %cst_16 {dimension_numbers = #tpu.dot_dimension_numbers<[1], [0], [0], [1], [0, 0, 1, 1], [], []>} : vector<16x128xf32>, vector<128x256xf32>, vector<16x256xf32> -> vector<16x256xf32>
    %17 = arith.truncf %16 : vector<16x256xf32> to vector<16x256xbf16>
    %18 = vector.extract_strided_slice %9 {offsets = [0, 0], sizes = [16, 128], strides = [1, 1]} : vector<16x256xbf16> to vector<16x128xbf16>
    %19 = vector.extract_strided_slice %9 {offsets = [0, 128], sizes = [16, 128], strides = [1, 1]} : vector<16x256xbf16> to vector<16x128xbf16>
    %20 = vector.extract_strided_slice %13 {offsets = [0, 0], sizes = [32, 128], strides = [1, 1]} : vector<32x384xbf16> to vector<32x128xbf16>
    %21 = vector.extract_strided_slice %13 {offsets = [0, 128], sizes = [32, 128], strides = [1, 1]} : vector<32x384xbf16> to vector<32x128xbf16>
    %22 = vector.extract_strided_slice %13 {offsets = [0, 256], sizes = [32, 128], strides = [1, 1]} : vector<32x384xbf16> to vector<32x128xbf16>
    %23 = vector.extract_strided_slice %17 {offsets = [0, 0], sizes = [16, 128], strides = [1, 1]} : vector<16x256xbf16> to vector<16x128xbf16>
    %24 = vector.extract_strided_slice %17 {offsets = [0, 128], sizes = [16, 128], strides = [1, 1]} : vector<16x256xbf16> to vector<16x128xbf16>
    %c0_17 = arith.constant 0 : index
    %c0_18 = arith.constant 0 : index
    %25 = vector.load %arg4[%c0_17, %c0_18] : memref<16x48xbf16, #tpu.memory_space<vmem>>, vector<16x48xbf16>
    %26 = tpu.concatenate %18, %20 in 0 : vector<16x128xbf16>, vector<32x128xbf16> -> vector<48x128xbf16>
    %cst_19 = arith.constant dense<0.000000e+00> : vector<16x128xf32>
    %27 = tpu.matmul %25, %26, %cst_19 {dimension_numbers = #tpu.dot_dimension_numbers<[1], [0], [0], [1], [0, 0, 1, 1], [], []>} : vector<16x48xbf16>, vector<48x128xbf16>, vector<16x128xf32> -> vector<16x128xf32>
    %c0_20 = arith.constant 0 : index
    %c0_21 = arith.constant 0 : index
    %28 = vector.load %arg5[%c0_20, %c0_21] : memref<32x64xbf16, #tpu.memory_space<vmem>>, vector<32x64xbf16>
    %29 = tpu.concatenate %21, %19, %23 in 0 : vector<32x128xbf16>, vector<16x128xbf16>, vector<16x128xbf16> -> vector<64x128xbf16>
    %cst_22 = arith.constant dense<0.000000e+00> : vector<32x128xf32>
    %30 = tpu.matmul %28, %29, %cst_22 {dimension_numbers = #tpu.dot_dimension_numbers<[1], [0], [0], [1], [0, 0, 1, 1], [], []>} : vector<32x64xbf16>, vector<64x128xbf16>, vector<32x128xf32> -> vector<32x128xf32>
    %c0_23 = arith.constant 0 : index
    %c0_24 = arith.constant 0 : index
    %31 = vector.load %arg6[%c0_23, %c0_24] : memref<16x48xbf16, #tpu.memory_space<vmem>>, vector<16x48xbf16>
    %32 = tpu.concatenate %24, %22 in 0 : vector<16x128xbf16>, vector<32x128xbf16> -> vector<48x128xbf16>
    %cst_25 = arith.constant dense<0.000000e+00> : vector<16x128xf32>
    %33 = tpu.matmul %31, %32, %cst_25 {dimension_numbers = #tpu.dot_dimension_numbers<[1], [0], [0], [1], [0, 0, 1, 1], [], []>} : vector<16x48xbf16>, vector<48x128xbf16>, vector<16x128xf32> -> vector<16x128xf32>
    %cst_26 = arith.constant 0.000000e+00 : f32
    %34 = vector.broadcast %cst_26 : f32 to vector<16x128xf32>
    %35 = arith.subf %34, %27 : vector<16x128xf32>
    %36 = math.exp %35 : vector<16x128xf32>
    %cst_27 = arith.constant 1.000000e+00 : f32
    %37 = vector.broadcast %cst_27 : f32 to vector<16x128xf32>
    %38 = arith.addf %37, %36 : vector<16x128xf32>
    %39 = tpu.reciprocal %38 {approx = true} : vector<16x128xf32> -> vector<16x128xf32>
    %c0_28 = arith.constant 0 : index
    %c0_29 = arith.constant 0 : index
    %40 = vector.load %arg10[%c0_28, %c0_29] : memref<16x128xf32, #tpu.memory_space<vmem>>, vector<16x128xf32>
    tpu.vector_store %arg10[%c0_28, %c0_29], %39 {strides = array<i32>} : memref<16x128xf32, #tpu.memory_space<vmem>>, vector<16x128xf32>,
    %cst_30 = arith.constant 0.000000e+00 : f32
    %41 = vector.broadcast %cst_30 : f32 to vector<32x128xf32>
    %42 = arith.subf %41, %30 : vector<32x128xf32>
    %43 = math.exp %42 : vector<32x128xf32>
    %cst_31 = arith.constant 1.000000e+00 : f32
    %44 = vector.broadcast %cst_31 : f32 to vector<32x128xf32>
    %45 = arith.addf %44, %43 : vector<32x128xf32>
    %46 = tpu.reciprocal %45 {approx = true} : vector<32x128xf32> -> vector<32x128xf32>
    %c0_32 = arith.constant 0 : index
    %c0_33 = arith.constant 0 : index
    %47 = vector.load %arg11[%c0_32, %c0_33] : memref<32x128xf32, #tpu.memory_space<vmem>>, vector<32x128xf32>
    tpu.vector_store %arg11[%c0_32, %c0_33], %46 {strides = array<i32>} : memref<32x128xf32, #tpu.memory_space<vmem>>, vector<32x128xf32>,
    %cst_34 = arith.constant 0.000000e+00 : f32
    %48 = vector.broadcast %cst_34 : f32 to vector<16x128xf32>
    %49 = arith.subf %48, %33 : vector<16x128xf32>
    %50 = math.exp %49 : vector<16x128xf32>
    %cst_35 = arith.constant 1.000000e+00 : f32
    %51 = vector.broadcast %cst_35 : f32 to vector<16x128xf32>
    %52 = arith.addf %51, %50 : vector<16x128xf32>
    %53 = tpu.reciprocal %52 {approx = true} : vector<16x128xf32> -> vector<16x128xf32>
    %c0_36 = arith.constant 0 : index
    %c0_37 = arith.constant 0 : index
    %54 = vector.load %arg12[%c0_36, %c0_37] : memref<16x128xf32, #tpu.memory_space<vmem>>, vector<16x128xf32>
    tpu.vector_store %arg12[%c0_36, %c0_37], %53 {strides = array<i32>} : memref<16x128xf32, #tpu.memory_space<vmem>>, vector<16x128xf32>,
    return
  }
  func.func @transform_0(%arg0: i32) -> (i32, i32) {
    %c0_i32 = arith.constant 0 : i32
    %c0_i32_0 = arith.constant 0 : i32
    %c0_i32_1 = arith.constant 0 : i32
    return %c0_i32, %c0_i32_0 : i32, i32
  }
  func.func @transform_1(%arg0: i32) -> (i32, i32) {
    %c0_i32 = arith.constant 0 : i32
    %c0_i32_0 = arith.constant 0 : i32
    %c0_i32_1 = arith.constant 0 : i32
    return %c0_i32, %c0_i32_0 : i32, i32
  }
  func.func @transform_2(%arg0: i32) -> (i32, i32) {
    %c0_i32 = arith.constant 0 : i32
    %c0_i32_0 = arith.constant 0 : i32
    %c0_i32_1 = arith.constant 0 : i32
    return %c0_i32, %c0_i32_0 : i32, i32
  }
  func.func @transform_3(%arg0: i32) -> (i32, i32) {
    %c0_i32 = arith.constant 0 : i32
    %c0_i32_0 = arith.constant 0 : i32
    %c0_i32_1 = arith.constant 0 : i32
    return %c0_i32, %c0_i32_0 : i32, i32
  }
  func.func @transform_4(%arg0: i32) -> (i32, i32) {
    %c0_i32 = arith.constant 0 : i32
    %c0_i32_0 = arith.constant 0 : i32
    %c0_i32_1 = arith.constant 0 : i32
    return %c0_i32, %c0_i32_0 : i32, i32
  }
  func.func @transform_5(%arg0: i32) -> (i32, i32) {
    %c0_i32 = arith.constant 0 : i32
    %c0_i32_0 = arith.constant 0 : i32
    %c0_i32_1 = arith.constant 0 : i32
    return %c0_i32, %c0_i32_0 : i32, i32
  }
  func.func @transform_6(%arg0: i32) -> (i32, i32, i32) {
    %c0_i32 = arith.constant 0 : i32
    %c0_i32_0 = arith.constant 0 : i32
    %c0_i32_1 = arith.constant 0 : i32
    return %arg0, %c0_i32, %c0_i32_0 : i32, i32, i32
  }
  func.func @transform_7(%arg0: i32) -> (i32, i32, i32) {
    %c0_i32 = arith.constant 0 : i32
    %c0_i32_0 = arith.constant 0 : i32
    %c0_i32_1 = arith.constant 0 : i32
    return %arg0, %c0_i32, %c0_i32_0 : i32, i32, i32
  }
  func.func @transform_8(%arg0: i32) -> (i32, i32, i32) {
    %c0_i32 = arith.constant 0 : i32
    %c0_i32_0 = arith.constant 0 : i32
    %c0_i32_1 = arith.constant 0 : i32
    return %arg0, %c0_i32, %c0_i32_0 : i32, i32, i32
  }
  func.func @transform_9(%arg0: i32) -> (i32, i32) {
    %c0_i32 = arith.constant 0 : i32
    %c0_i32_0 = arith.constant 0 : i32
    %c0_i32_1 = arith.constant 0 : i32
    return %c0_i32, %c0_i32_0 : i32, i32
  }
  func.func @transform_10(%arg0: i32) -> (i32, i32) {
    %c0_i32 = arith.constant 0 : i32
    %c0_i32_0 = arith.constant 0 : i32
    %c0_i32_1 = arith.constant 0 : i32
    return %c0_i32, %c0_i32_0 : i32, i32
  }
  func.func @transform_11(%arg0: i32) -> (i32, i32) {
    %c0_i32 = arith.constant 0 : i32
    %c0_i32_0 = arith.constant 0 : i32
    %c0_i32_1 = arith.constant 0 : i32
    return %c0_i32, %c0_i32_0 : i32, i32
  }
}

</mosaic_0001>

<bundles_post_ra>
// kernel: scconv_forward.1
= control target key start
LH: loop header
LB: loop body
LE: loop exit
PB: predicated region body
PF: predicated region fallthrough
CT: control target
= control target key end

     0   :  { %s1414_s17 = smov 0   ;;  %s1698_s0 = inlined_call_operand.vmem [shape: f32[16,128], index: 0, kind: input, shape index: {}]   ;;  %s1699_s1 = inlined_call_operand.vmem [shape: f32[32,128], index: 1, kind: input, shape index: {}]   ;;  %s1700_s2 = inlined_call_operand.vmem [shape: f32[16,128], index: 2, kind: input, shape index: {}]   ;;  %s1701_s3 = inlined_call_operand.vmem [shape: bf16[16,48], index: 3, kind: input, shape index: {}]   ;;  %s1702_s4 = inlined_call_operand.vmem [shape: bf16[32,64], index: 4, kind: input, shape index: {}]   ;;  %s1703_s5 = inlined_call_operand.vmem [shape: bf16[16,48], index: 5, kind: input, shape index: {}]   ;;  %s1704_s6 = inlined_call_operand.vmem [shape: f32[2,128,256], index: 6, kind: input, shape index: {}]   ;;  %s1705_s7 = inlined_call_operand.vmem [shape: f32[2,128,384], index: 7, kind: input, shape index: {}]   ;;  %s1706_s8 = inlined_call_operand.vmem [shape: f32[2,128,256], index: 8, kind: input, shape index: {}]   ;;  %s1707_s9 = inlined_call_operand.vmem [shape: f32[16,128], index: 9, kind: output, shape index: {0}]   ;;  %s1708_s10 = inlined_call_operand.vmem [shape: f32[32,128], index: 10, kind: output, shape index: {1}]   ;;  %s1709_s11 = inlined_call_operand.vmem [shape: f32[16,128], index: 11, kind: output, shape index: {2}]  }
   0x1 LB: > { %s1171_s18 = sadd.s32 4294967295, %s1350_s17   ;;  %p1174_p0 = scmp.ge.s32.totalorder %s1350_s17, 1  ;;  %s1350_s17 = sphi %s1414_s17, %s22_s17  }
   0x2   : > { %p347_p1 = scmp.lt.s32.totalorder %s1350_s17, 3 }
   0x4   : > { %p348_p2 = pnand %p1174_p0, %p347_p1 }
   0x5   : > { %p392_p3 = scmp.lt.s32.totalorder (!%p348_p2), %s1171_s18, 1  ;;  %p1180_p4 = scmp.ne.s32.totalorder (!%p348_p2), %s1171_s18, 0 }
   0x6   : > { %351 = sbr.rel (%p348_p2) target bundleno = 543 (0x21f), region = 56 }
   0xb   : > { %s393_s19 = scalar_select %p392_p3, %s1171_s18, 1 }
   0xc   : > { %411 = sbr.rel (%p1180_p4) target bundleno = 22 (0x16), region = 60 }
   0xd   : > { %s1191_s20 = sshll.u32 %s393_s19, 8  ;;  %s1297_s21 = smul.u32 384, %s393_s19 }
   0xe   : > { %s1425_s24 = scalar_lea.vmem %s1704_s6, %s1191_s20  ;;  %s1430_s27 = scalar_lea.vmem %s1706_s8, %s1191_s20 }
   0xf   : > { %s1435_s30 = scalar_lea.vmem %s1705_s7, %s1297_s21 }
  0x11   : > { %v412_v0 = vld [vmem:[%s1698_s0] sm:$0xff]  ;;  %v413_v1 = vld [vmem:[%s1698_s0 + $0x8] sm:$0xff]  ;;  %v418_v4 = vld [vmem:[%s1699_s1 + $0x10] sm:$0xff] }
  0x12   : > { %v416_v2 = vld [vmem:[%s1699_s1] sm:$0xff]  ;;  %414 = vst [vmem:[%s1707_s9] sm:$0xff] %v412_v0  ;;  %415 = vst [vmem:[%s1707_s9 + $0x8] sm:$0xff] %v413_v1  ;;  %v417_v3 = vld [vmem:[%s1699_s1 + $0x8] sm:$0xff] }
  0x13   : > { %420 = vst [vmem:[%s1708_s10] sm:$0xff] %v416_v2  ;;  %v419_v5 = vld [vmem:[%s1699_s1 + $0x18] sm:$0xff]  ;;  %421 = vst [vmem:[%s1708_s10 + $0x8] sm:$0xff] %v417_v3  ;;  %v424_v6 = vld [vmem:[%s1700_s2] sm:$0xff] }
  0x14   : > { %422 = vst [vmem:[%s1708_s10 + $0x10] sm:$0xff] %v418_v4  ;;  %423 = vst [vmem:[%s1708_s10 + $0x18] sm:$0xff] %v419_v5  ;;  %v425_v7 = vld [vmem:[%s1700_s2 + $0x8] sm:$0xff] }
  0x15   : > { %426 = vst [vmem:[%s1709_s11] sm:$0xff] %v424_v6  ;;  %427 = vst [vmem:[%s1709_s11 + $0x8] sm:$0xff] %v425_v7 }
  0x16 PF: > { %v467_v8 = vld [vmem:[%s1425_s24 + $0xf8] sm:$0xff]  ;;  %v593_v9 = vld [vmem:[%s1435_s30 + $0x170] sm:$0xff]  ;;  %v592_v11 = vld [vmem:[%s1435_s30 + $0x168] sm:$0xff]  ;;  %vm1353_vm0 = vmmov 0   ;;  %vm952_vm1 = vcmask 523264   ;;  %vm893_vm2 = vcmask 392192  }
  0x17   : > { %v466_v10 = vld [vmem:[%s1425_s24 + $0xf0] sm:$0xff]  ;;  %468 = vmatprep.subr.mxu0 %v467_v8  ;;  %595 = vmatprep.subr.mxu1 %v593_v9  ;;  %v465_v12 = vld [vmem:[%s1425_s24 + $0xe8] sm:$0xff]  ;;  %v590_v13 = vld [vmem:[%s1435_s30 + $0x158] sm:$0xff] }
  0x18   : > { %469 = vmatpush1.msra.mxu0 %v466_v10  ;;  %596 = vmatpush1.msra.mxu1 %v592_v11  ;;  %v464_v14 = vld [vmem:[%s1425_s24 + $0xe0] sm:$0xff]  ;;  %v589_v15 = vld [vmem:[%s1435_s30 + $0x150] sm:$0xff]  ;;  %v463_v16 = vld [vmem:[%s1425_s24 + $0xd8] sm:$0xff]  ;;  %v1352_v10 = vmov 0.0  }
  0x19   : > { %470 = vmatprep.subr.mxu0 %v465_v12  ;;  %597 = vmatprep.subr.mxu1 %v590_v13  ;;  %v587_v17 = vld [vmem:[%s1435_s30 + $0x140] sm:$0xff]  ;;  %v462_v18 = vld [vmem:[%s1425_s24 + $0xd0] sm:$0xff]  ;;  %v586_v19 = vld [vmem:[%s1435_s30 + $0x138] sm:$0xff] }
  0x1a   : > { %471 = vmatpush1.msra.mxu0 %v464_v14  ;;  %598 = vmatpush1.msra.mxu1 %v589_v15  ;;  %v461_v20 = vld [vmem:[%s1425_s24 + $0xc8] sm:$0xff]  ;;  %v460_v22 = vld [vmem:[%s1425_s24 + $0xc0] sm:$0xff]  ;;  %v459_v24 = vld [vmem:[%s1425_s24 + $0xb8] sm:$0xff] }
  0x1b   : > { %v584_v21 = vld [vmem:[%s1435_s30 + $0x128] sm:$0xff]  ;;  %472 = vmatprep.subr.mxu0 %v463_v16  ;;  %599 = vmatprep.subr.mxu1 %v587_v17  ;;  %v583_v23 = vld [vmem:[%s1435_s30 + $0x120] sm:$0xff]  ;;  %v581_v25 = vld [vmem:[%s1435_s30 + $0x110] sm:$0xff] }
  0x1c   : > { %473 = vmatpush1.msra.mxu0 %v462_v18  ;;  %600 = vmatpush1.msra.mxu1 %v586_v19  ;;  %v458_v26 = vld [vmem:[%s1425_s24 + $0xb0] sm:$0xff]  ;;  %v580_v27 = vld [vmem:[%s1435_s30 + $0x108] sm:$0xff]  ;;  %v578_v29 = vld [vmem:[%s1435_s30 + $0xf8] sm:$0xff] }
  0x1d   : > { %474 = vmatprep.subr.mxu0 %v461_v20  ;;  %601 = vmatprep.subr.mxu1 %v584_v21  ;;  %v457_v28 = vld [vmem:[%s1425_s24 + $0xa8] sm:$0xff]  ;;  %v456_v30 = vld [vmem:[%s1425_s24 + $0xa0] sm:$0xff]  ;;  %v577_v31 = vld [vmem:[%s1435_s30 + $0xf0] sm:$0xff] }
  0x1e   : > { %475 = vmatpush1.msra.mxu0 %v460_v22  ;;  %602 = vmatpush1.msra.mxu1 %v583_v23  ;;  %v455_v32 = vld [vmem:[%s1425_s24 + $0x98] sm:$0xff]  ;;  %v575_v33 = vld [vmem:[%s1435_s30 + $0xe0] sm:$0xff]  ;;  %v454_v34 = vld [vmem:[%s1425_s24 + $0x90] sm:$0xff] }
  0x1f   : > { %476 = vmatprep.subr.mxu0 %v459_v24  ;;  %603 = vmatprep.subr.mxu1 %v581_v25  ;;  %v574_v35 = vld [vmem:[%s1435_s30 + $0xd8] sm:$0xff]  ;;  %v453_v36 = vld [vmem:[%s1425_s24 + $0x88] sm:$0xff]  ;;  %v452_v38 = vld [vmem:[%s1425_s24 + $0x80] sm:$0xff] }
  0x20   : > { %477 = vmatpush1.msra.mxu0 %v458_v26  ;;  %604 = vmatpush1.msra.mxu1 %v580_v27  ;;  %v572_v37 = vld [vmem:[%s1435_s30 + $0xc8] sm:$0xff]  ;;  %v571_v39 = vld [vmem:[%s1435_s30 + $0xc0] sm:$0xff]  ;;  %v451_v40 = vld [vmem:[%s1425_s24 + $0x78] sm:$0xff] }
  0x21   : > { %478 = vmatprep.subr.mxu0 %v457_v28  ;;  %605 = vmatprep.subr.mxu1 %v578_v29  ;;  %v569_v41 = vld [vmem:[%s1435_s30 + $0xb0] sm:$0xff]  ;;  %v568_v43 = vld [vmem:[%s1435_s30 + $0xa8] sm:$0xff]  ;;  %v566_v45 = vld [vmem:[%s1435_s30 + $0x98] sm:$0xff] }
  0x22   : > { %479 = vmatpush1.msra.mxu0 %v456_v30  ;;  %606 = vmatpush1.msra.mxu1 %v577_v31  ;;  %v450_v42 = vld [vmem:[%s1425_s24 + $0x70] sm:$0xff]  ;;  %v449_v44 = vld [vmem:[%s1425_s24 + $0x68] sm:$0xff]  ;;  %v448_v46 = vld [vmem:[%s1425_s24 + $0x60] sm:$0xff] }
  0x23   : > { %480 = vmatprep.subr.mxu0 %v455_v32  ;;  %607 = vmatprep.subr.mxu1 %v575_v33  ;;  %v565_v47 = vld [vmem:[%s1435_s30 + $0x90] sm:$0xff]  ;;  %v447_v48 = vld [vmem:[%s1425_s24 + $0x58] sm:$0xff]  ;;  %v563_v49 = vld [vmem:[%s1435_s30 + $0x80] sm:$0xff] }
  0x24   : > { %481 = vmatpush1.msra.mxu0 %v454_v34  ;;  %608 = vmatpush1.msra.mxu1 %v574_v35  ;;  %v446_v50 = vld [vmem:[%s1425_s24 + $0x50] sm:$0xff]  ;;  %v562_v51 = vld [vmem:[%s1435_s30 + $0x78] sm:$0xff]  ;;  %v445_v52 = vld [vmem:[%s1425_s24 + $0x48] sm:$0xff] }
  0x25   : > { %482 = vmatprep.subr.mxu0 %v453_v36  ;;  %609 = vmatprep.subr.mxu1 %v572_v37  ;;  %v560_v53 = vld [vmem:[%s1435_s30 + $0x68] sm:$0xff]  ;;  %v444_v54 = vld [vmem:[%s1425_s24 + $0x40] sm:$0xff]  ;;  %v443_v56 = vld [vmem:[%s1425_s24 + $0x38] sm:$0xff] }
  0x26   : > { %483 = vmatpush1.msra.mxu0 %v452_v38  ;;  %610 = vmatpush1.msra.mxu1 %v571_v39  ;;  %v559_v55 = vld [vmem:[%s1435_s30 + $0x60] sm:$0xff]  ;;  %v557_v57 = vld [vmem:[%s1435_s30 + $0x50] sm:$0xff]  ;;  %v556_v59 = vld [vmem:[%s1435_s30 + $0x48] sm:$0xff] }
  0x27   : > { %484 = vmatprep.subr.mxu0 %v451_v40  ;;  %611 = vmatprep.subr.mxu1 %v569_v41  ;;  %v442_v58 = vld [vmem:[%s1425_s24 + $0x30] sm:$0xff]  ;;  %v441_v60 = vld [vmem:[%s1425_s24 + $0x28] sm:$0xff]  ;;  %v554_v61 = vld [vmem:[%s1435_s30 + $0x38] sm:$0xff] }
  0x28   : > { %485 = vmatpush1.msra.mxu0 %v450_v42  ;;  %612 = vmatpush1.msra.mxu1 %v568_v43  ;;  %v440_v62 = vld [vmem:[%s1425_s24 + $0x20] sm:$0xff]  ;;  %v553_v63 = vld [vmem:[%s1435_s30 + $0x30] sm:$0xff]  ;;  %v439_v0 = vld [vmem:[%s1425_s24 + $0x18] sm:$0xff] }
  0x29   : > { %486 = vmatprep.subr.mxu0 %v449_v44  ;;  %613 = vmatprep.subr.mxu1 %v566_v45  ;;  %v551_v1 = vld [vmem:[%s1435_s30 + $0x20] sm:$0xff]  ;;  %v438_v2 = vld [vmem:[%s1425_s24 + $0x10] sm:$0xff]  ;;  %v550_v3 = vld [vmem:[%s1435_s30 + $0x18] sm:$0xff] }
  0x2a   : > { %487 = vmatpush1.msra.mxu0 %v448_v46  ;;  %614 = vmatpush1.msra.mxu1 %v565_v47  ;;  %v437_v4 = vld [vmem:[%s1425_s24 + $0x8] sm:$0xff]  ;;  %v436_v6 = vld [vmem:[%s1425_s24] sm:$0xff]  ;;  %v594_v11 = vld [vmem:[%s1435_s30 + $0x178] sm:$0xff] }
  0x2b   : > { %488 = vmatprep.subr.mxu0 %v447_v48  ;;  %615 = vmatprep.subr.mxu1 %v563_v49  ;;  %v548_v5 = vld [vmem:[%s1435_s30 + $0x8] sm:$0xff]  ;;  %v547_v7 = vld [vmem:[%s1435_s30] sm:$0xff]  ;;  %v806_v12 = vld [vmem:[%s1430_s27 + $0xf8] sm:$0xff] }
  0x2c   : > { %489 = vmatpush1.msra.mxu0 %v446_v50  ;;  %616 = vmatpush1.msra.mxu1 %v562_v51  ;;  %v428_v8 = vld [vmem:[%s1707_s9] sm:$0xff]  ;;  %v805_v13 = vld [vmem:[%s1430_s27 + $0xf0] sm:$0xff]  ;;  %v804_v15 = vld [vmem:[%s1430_s27 + $0xe8] sm:$0xff] }
  0x2d   : > { %490 = vmatprep.subr.mxu0 %v445_v52  ;;  %617 = vmatprep.subr.mxu1 %v560_v53  ;;  %v1555_v9 = vld [vmem:[%s1708_s10] sm:$0xff]  ;;  %v429_v17 = vld [vmem:[%s1707_s9 + $0x8] sm:$0xff]  ;;  %v802_v20 = vld [vmem:[%s1430_s27 + $0xd8] sm:$0xff] }
  0x2e   : > { %491 = vmatpush1.msra.mxu0 %v444_v54  ;;  %618 = vmatpush1.msra.mxu1 %v559_v55  ;;  %v591_v14 = vld [vmem:[%s1435_s30 + $0x160] sm:$0xff]  ;;  %v1572_v18 = vld [vmem:[%s1708_s10 + $0x8] sm:$0xff]  ;;  %v801_v21 = vld [vmem:[%s1430_s27 + $0xd0] sm:$0xff] }
  0x2f   : > { %492 = vmatprep.subr.mxu0 %v443_v56  ;;  %619 = vmatprep.subr.mxu1 %v557_v57  ;;  %v803_v16 = vld [vmem:[%s1430_s27 + $0xe0] sm:$0xff]  ;;  %v588_v19 = vld [vmem:[%s1435_s30 + $0x148] sm:$0xff]  ;;  %v585_v22 = vld [vmem:[%s1435_s30 + $0x130] sm:$0xff] }
  0x30   : > { %493 = vmatpush1.msra.mxu0 %v442_v58  ;;  %620 = vmatpush1.msra.mxu1 %v556_v59  ;;  %v800_v23 = vld [vmem:[%s1430_s27 + $0xc8] sm:$0xff]  ;;  %v799_v24 = vld [vmem:[%s1430_s27 + $0xc0] sm:$0xff]  ;;  %v582_v25 = vld [vmem:[%s1435_s30 + $0x118] sm:$0xff] }
  0x31   : > { %494 = vmatprep.subr.mxu0 %v441_v60  ;;  %621 = vmatprep.subr.mxu1 %v554_v61  ;;  %v1587_v26 = vld [vmem:[%s1708_s10 + $0x10] sm:$0xff]  ;;  %v798_v27 = vld [vmem:[%s1430_s27 + $0xb8] sm:$0xff]  ;;  %v579_v29 = vld [vmem:[%s1435_s30 + $0x100] sm:$0xff] }
  0x32   : > { %495 = vmatpush1.msra.mxu0 %v440_v62  ;;  %622 = vmatpush1.msra.mxu1 %v553_v63  ;;  %v797_v28 = vld [vmem:[%s1430_s27 + $0xb0] sm:$0xff]  ;;  %v796_v30 = vld [vmem:[%s1430_s27 + $0xa8] sm:$0xff]  ;;  %v795_v31 = vld [vmem:[%s1430_s27 + $0xa0] sm:$0xff] }
  0x33   : > { %496 = vmatprep.subr.mxu0 %v439_v0  ;;  %623 = vmatprep.subr.mxu1 %v551_v1  ;;  %v576_v32 = vld [vmem:[%s1435_s30 + $0xe8] sm:$0xff]  ;;  %v1600_v33 = vld [vmem:[%s1708_s10 + $0x18] sm:$0xff]  ;;  %v793_v35 = vld [vmem:[%s1430_s27 + $0x90] sm:$0xff] }
  0x34   : > { %497 = vmatpush1.msra.mxu0 %v438_v2  ;;  %624 = vmatpush1.msra.mxu1 %v550_v3  ;;  %v794_v34 = vld [vmem:[%s1430_s27 + $0x98] sm:$0xff]  ;;  %v573_v36 = vld [vmem:[%s1435_s30 + $0xd0] sm:$0xff]  ;;  %v792_v37 = vld [vmem:[%s1430_s27 + $0x88] sm:$0xff] }
  0x35   : > { %498 = vmatprep.subr.mxu0 %v437_v4  ;;  %625 = vmatprep.subr.mxu1 %v548_v5  ;;  %v791_v38 = vld [vmem:[%s1430_s27 + $0x80] sm:$0xff]  ;;  %v570_v39 = vld [vmem:[%s1435_s30 + $0xb8] sm:$0xff]  ;;  %v789_v41 = vld [vmem:[%s1430_s27 + $0x70] sm:$0xff] }
  0x36   : > { %499 = vmatpush1.msra.mxu0 %v436_v6  ;;  %532 = vmatprep.mubr.f32.mxu0 %v1352_v10  ;;  %v790_v40 = vld [vmem:[%s1430_s27 + $0x78] sm:$0xff]  ;;  %v567_v42 = vld [vmem:[%s1435_s30 + $0xa0] sm:$0xff]  ;;  %v788_v43 = vld [vmem:[%s1430_s27 + $0x68] sm:$0xff] }
  0x37   : > { %626 = vmatpush1.msra.mxu1 %v547_v7  ;;  %659 = vmatprep.mubr.f32.mxu1 %v1352_v10  ;;  %v787_v44 = vld [vmem:[%s1430_s27 + $0x60] sm:$0xff]  ;;  %v564_v45 = vld [vmem:[%s1435_s30 + $0x88] sm:$0xff]  ;;  %v786_v46 = vld [vmem:[%s1430_s27 + $0x58] sm:$0xff] }
  0x38   : > { %533 = vmatmul.mubr.f32.vlgmr.msra.gmra.mxu0 %v428_v8  ;;  %660 = vmatmul.mubr.f32.vlgmr.msra.gmra.mxu1 %v1555_v9  ;;  %v785_v47 = vld [vmem:[%s1430_s27 + $0x50] sm:$0xff]  ;;  %v784_v49 = vld [vmem:[%s1430_s27 + $0x48] sm:$0xff]  ;;  %v783_v50 = vld [vmem:[%s1430_s27 + $0x40] sm:$0xff] }
  0x39   : > { %1227 = vmatprep.subr.mxu0 %v594_v11  ;;  %807 = vmatprep.subr.mxu1 %v806_v12  ;;  %v561_v48 = vld [vmem:[%s1435_s30 + $0x70] sm:$0xff]  ;;  %v558_v51 = vld [vmem:[%s1435_s30 + $0x58] sm:$0xff]  ;;  %v555_v54 = vld [vmem:[%s1435_s30 + $0x40] sm:$0xff] }
  0x3a   : > { %1228 = vmatpush3.msra.mxu0 %v594_v11  ;;  %808 = vmatpush1.msra.mxu1 %v805_v13  ;;  %v782_v52 = vld [vmem:[%s1430_s27 + $0x38] sm:$0xff]  ;;  %v781_v53 = vld [vmem:[%s1430_s27 + $0x30] sm:$0xff]  ;;  %v780_v55 = vld [vmem:[%s1430_s27 + $0x28] sm:$0xff] }
  0x3b   : > { %1229 = vmatprep.subr.mxu0 %v591_v14  ;;  %809 = vmatprep.subr.mxu1 %v804_v15  ;;  %v779_v56 = vld [vmem:[%s1430_s27 + $0x20] sm:$0xff]  ;;  %v552_v57 = vld [vmem:[%s1435_s30 + $0x28] sm:$0xff]  ;;  %v778_v58 = vld [vmem:[%s1430_s27 + $0x18] sm:$0xff] }
  0x3c   : > { %538 = vmatprep.mubr.f32.mxu0 %v1352_v10  ;;  %665 = vmatprep.mubr.f32.mxu1 %v1352_v10  ;;  %v777_v59 = vld [vmem:[%s1430_s27 + $0x10] sm:$0xff]  ;;  %v776_v61 = vld [vmem:[%s1430_s27 + $0x8] sm:$0xff]  ;;  %v775_v62 = vld [vmem:[%s1430_s27] sm:$0xff] }
  0x3d   : > { %1230 = vmatpush3.msra.mxu0 %v591_v14  ;;  %810 = vmatpush1.msra.mxu1 %v803_v16  ;;  %v549_v60 = vld [vmem:[%s1435_s30 + $0x10] sm:$0xff]  ;;  %v434_v63 = vld [vmem:[%s1709_s11] sm:$0xff]  ;;  %v435_v0 = vld [vmem:[%s1709_s11 + $0x8] sm:$0xff] }
  0x3e   : > { %539 = vmatmul.mubr.f32.gmra.mxu0 %v429_v17  ;;  %666 = vmatmul.mubr.f32.gmra.mxu1 %v1572_v18  ;;  %v1310_v1 = vld [vmem:[%s1702_s4] sm:$0xff]  }
  0x3f   : > { %1231 = vmatprep.subr.mxu0 %v588_v19  ;;  %811 = vmatprep.subr.mxu1 %v802_v20  ;;  %v1308_v16 = vld [vmem:[%s1701_s3] sm:$0xff]  }
  0x40   : > { %1232 = vmatpush3.msra.mxu0 %v588_v19  ;;  %812 = vmatpush1.msra.mxu1 %v801_v21 }
  0x41   : > { %1233 = vmatprep.subr.mxu0 %v585_v22  ;;  %813 = vmatprep.subr.mxu1 %v800_v23 }
  0x42   : > { %671 = vmatprep.mubr.f32.mxu1 %v1352_v10  ;;  %1234 = vmatpush3.msra.mxu0 %v585_v22 }
  0x43   : > { %814 = vmatpush1.msra.mxu1 %v799_v24  ;;  %1235 = vmatprep.subr.mxu0 %v582_v25 }
  0x44   : > { %672 = vmatmul.mubr.f32.gmra.mxu1 %v1587_v26  ;;  %815 = vmatprep.subr.mxu1 %v798_v27 }
  0x45   : > { %1236 = vmatpush3.msra.mxu0 %v582_v25  ;;  %816 = vmatpush1.msra.mxu1 %v797_v28 }
  0x46   : > { %1237 = vmatprep.subr.mxu0 %v579_v29  ;;  %817 = vmatprep.subr.mxu1 %v796_v30 }
  0x47   : > { %677 = vmatprep.mubr.f32.mxu1 %v1352_v10  ;;  %1238 = vmatpush3.msra.mxu0 %v579_v29 }
  0x48   : > { %818 = vmatpush1.msra.mxu1 %v795_v31  ;;  %1239 = vmatprep.subr.mxu0 %v576_v32 }
  0x49   : > { %678 = vmatmul.mubr.f32.gmra.mxu1 %v1600_v33  ;;  %819 = vmatprep.subr.mxu1 %v794_v34  ;;  %v1309_v34 = vld [vmem:[%s1703_s5] sm:$0xff]  }
  0x4a   : > { %1240 = vmatpush3.msra.mxu0 %v576_v32  ;;  %820 = vmatpush1.msra.mxu1 %v793_v35  ;;  %v1311_v35 = vld [vmem:[%s1702_s4 + $0x8] sm:$0xff]  }
  0x4b   : > { %1241 = vmatprep.subr.mxu0 %v573_v36  ;;  %821 = vmatprep.subr.mxu1 %v792_v37 }
  0x4c   : > { %1242 = vmatpush3.msra.mxu0 %v573_v36  ;;  %822 = vmatpush1.msra.mxu1 %v791_v38 }
  0x4d   : > { %1243 = vmatprep.subr.mxu0 %v570_v39  ;;  %823 = vmatprep.subr.mxu1 %v790_v40 }
  0x4e   : > { %1244 = vmatpush3.msra.mxu0 %v570_v39  ;;  %824 = vmatpush1.msra.mxu1 %v789_v41 }
  0x4f   : > { %1245 = vmatprep.subr.mxu0 %v567_v42  ;;  %825 = vmatprep.subr.mxu1 %v788_v43 }
  0x50   : > { %1246 = vmatpush3.msra.mxu0 %v567_v42  ;;  %826 = vmatpush1.msra.mxu1 %v787_v44 }
  0x51   : > { %1247 = vmatprep.subr.mxu0 %v564_v45  ;;  %827 = vmatprep.subr.mxu1 %v786_v46 }
  0x52   : > { %1248 = vmatpush3.msra.mxu0 %v564_v45  ;;  %828 = vmatpush1.msra.mxu1 %v785_v47 }
  0x53   : > { %1249 = vmatprep.subr.mxu0 %v561_v48  ;;  %829 = vmatprep.subr.mxu1 %v784_v49 }
  0x54   : > { %1250 = vmatpush3.msra.mxu0 %v561_v48  ;;  %830 = vmatpush1.msra.mxu1 %v783_v50 }
  0x55   : > { %1251 = vmatprep.subr.mxu0 %v558_v51  ;;  %831 = vmatprep.subr.mxu1 %v782_v52 }
  0x56   : > { %1252 = vmatpush3.msra.mxu0 %v558_v51  ;;  %832 = vmatpush1.msra.mxu1 %v781_v53 }
  0x57   : > { %1253 = vmatprep.subr.mxu0 %v555_v54  ;;  %833 = vmatprep.subr.mxu1 %v780_v55 }
  0x58   : > { %1254 = vmatpush3.msra.mxu0 %v555_v54  ;;  %834 = vmatpush1.msra.mxu1 %v779_v56 }
  0x59   : > { %1255 = vmatprep.subr.mxu0 %v552_v57  ;;  %835 = vmatprep.subr.mxu1 %v778_v58 }
  0x5a   : > { %1256 = vmatpush3.msra.mxu0 %v552_v57  ;;  %836 = vmatpush1.msra.mxu1 %v777_v59 }
  0x5b   : > { %1257 = vmatprep.subr.mxu0 %v549_v60  ;;  %837 = vmatprep.subr.mxu1 %v776_v61 }
  0x5c   : > { %1258 = vmatpush3.msra.mxu0 %v549_v60  ;;  %1259 = vmatprep.mubr.f32.mxu0 %v1555_v9 }
  0x5d   : > { %838 = vmatpush1.msra.mxu1 %v775_v62  ;;  %871 = vmatprep.mubr.f32.mxu1 %v1352_v10 }
  0x5e   : > { %1260 = vmatmul.mubr.f32.vlgmr.msra.gmra.mxu0 %v1572_v18  ;;  %872 = vmatmul.mubr.f32.vlgmr.msra.gmra.mxu1 %v434_v63 }
  0x5f   : > { %1262 = vmatprep.mubr.f32.mxu0 %v1587_v26  ;;  %877 = vmatprep.mubr.f32.mxu1 %v1352_v10 }
  0x60   : > { %1265 = vmatprep.subr.bf16.mxu0 %v1352_v10 }
  0x62   : > { %1263 = vmatmul.mubr.f32.gmra.mxu0 %v1600_v33  ;;  %878 = vmatmul.mubr.f32.gmra.mxu1 %v435_v0 }
  0x63   : > { %1271 = vmatprep.mubr.msk.bf16.mxu0 %vm1353_vm0, %v1352_v10  ;;  %1283 = vmatprep.mubr.msk.bf16.mxu1 %vm952_vm1, %v1310_v1 }
  0xf8   : > { %v661_v2 = vpop.f32.mrf.mxu1  ;;  %v534_v8 = vpop.f32.mrf.mxu0 }
  0xfa   : > { %v663_v3 = vpop.f32.mrf.mxu1  ;;  %v536_v12 = vpop.f32.mrf.mxu0 }
  0xfe   : > { %v667_v4 = vpop.f32.mrf.mxu1  ;;  %v540_v14 = vpop.f32.mrf.mxu0 }
  0xff   : > { %v769_v13 = vpack.c.bf16 %v667_v4, %v661_v2  ;;  %v545_v15 = vpack.c.bf16 %v540_v14, %v534_v8 }
 0x100   : > { %v669_v5 = vpop.f32.mrf.mxu1  ;;  %v542_v17 = vpop.f32.mrf.mxu0 }
 0x101   : > { %v546_v27 = vpack.c.bf16 %v542_v17, %v536_v12  ;;  %v770_v32 = vpack.c.bf16 %v669_v5, %v663_v3 }
 0x104   : > { %v673_v6 = vpop.f32.mrf.mxu1 }
 0x106   : > { %v675_v7 = vpop.f32.mrf.mxu1 }
 0x109   : > { %v679_v9 = vpop.f32.mrf.mxu1 }
 0x10a   : > { %v772_v11 = vpack.c.bf16 %v679_v9, %v673_v6 }
 0x10b   : > { %v681_v18 = vpop.f32.mrf.mxu1 }
 0x10c   : > { %1266 = vmatpush3.bf16.msra.mxu0 %v772_v11  ;;  %v773_v29 = vpack.c.bf16 %v681_v18, %v675_v7 }
 0x10d   : > { %1267 = vmatprep.subr.bf16.mxu0 %v1352_v10 }
 0x110   : > { %1268 = vmatpush3.bf16.msra.mxu0 %v769_v13 }
 0x111   : > { %1269 = vmatprep.subr.bf16.mxu0 %v1352_v10 }
 0x114   : > { %1270 = vmatpush3.bf16.msra.mxu0 %v545_v15 }
 0x115   : > { %1287 = vmatprep.subr.bf16.mxu0 %v1352_v10 }
 0x117   : > { %1272 = vmatmul.mubr.msk.bf16.vlgmr.msra.gmra.mxu0 %vm893_vm2, %v1308_v16 }
 0x118   : > { %1293 = vmatprep.mubr.msk.bf16.mxu0 %vm1353_vm0, %v1352_v10 }
 0x11e   : > { %v1261_v19 = vpop.f32.mrf.mxu0  ;;  %v873_v20 = vpop.f32.mrf.mxu1 }
 0x120   : > { %v750_v21 = vpop.f32.mrf.mxu0  ;;  %v875_v22 = vpop.f32.mrf.mxu1 }
 0x121   : > { %v771_v30 = vpack.c.bf16 %v1261_v19, %v750_v21 }
 0x122   : > { %v1264_v23 = vpop.f32.mrf.mxu0  ;;  %v879_v24 = vpop.f32.mrf.mxu1 }
 0x123   : > { %v884_v25 = vpack.c.bf16 %v879_v24, %v873_v20 }
 0x124   : > { %v760_v26 = vpop.f32.mrf.mxu0  ;;  %v881_v31 = vpop.f32.mrf.mxu1 }
 0x125   : > { %v774_v28 = vpack.c.bf16 %v1264_v23, %v760_v26  ;;  %1275 = vmatprep.subr.bf16.mxu1 %v884_v25  ;;  %v885_v33 = vpack.c.bf16 %v881_v31, %v875_v22 }
 0x126   : > { %1276 = vmatpush3.bf16.msra.mxu1 %v884_v25 }
 0x127   : > { %1277 = vmatprep.subr.bf16.mxu1 %v546_v27  ;;  %1288 = vmatpush3.bf16.msra.mxu0 %v774_v28 }
 0x128   : > { %1289 = vmatprep.subr.bf16.mxu0 %v1352_v10 }
 0x12a   : > { %1278 = vmatpush3.bf16.msra.mxu1 %v546_v27 }
 0x12b   : > { %1279 = vmatprep.subr.bf16.mxu1 %v773_v29  ;;  %1290 = vmatpush3.bf16.msra.mxu0 %v771_v30 }
 0x12c   : > { %1291 = vmatprep.subr.bf16.mxu0 %v1352_v10 }
 0x12e   : > { %1280 = vmatpush3.bf16.msra.mxu1 %v773_v29 }
 0x12f   : > { %1281 = vmatprep.subr.bf16.mxu1 %v770_v32  ;;  %1292 = vmatpush3.bf16.msra.mxu0 %v885_v33 }
 0x132   : > { %1282 = vmatpush3.bf16.msra.mxu1 %v770_v32  ;;  %1294 = vmatmul.mubr.msk.bf16.vlgmr.msra.gmra.mxu0 %vm893_vm2, %v1309_v34 }
 0x135   : > { %1284 = vmatmul.mubr.msk.bf16.vlgmr.msra.gmra.mxu1 %vm952_vm1, %v1311_v35 }
 0x1d7   : > { %v931_v36 = vpop.f32.mrf.mxu0 }
 0x1d8   : > { %v1059_v10 = vsub.f32 0.0, %v931_v36 }
 0x1d9   : > { %v1273_v37 = vpop.f32.mrf.mxu0 }
 0x1da   : > { %v1061_v38 = vmul.f32 1.442695, %v1059_v10 }
 0x1db   : > { %v934_v39 = vpop.f32.mrf.mxu0 }
 0x1dc   : > { %1312 = vpow2.f32 %v1061_v38  ;;  %v1060_v40 = vsub.f32 0.0, %v934_v39 }
 0x1dd   : > { %v1274_v41 = vpop.f32.mrf.mxu0 }
 0x1de   : > { %v1063_v42 = vmul.f32 1.442695, %v1060_v40 }
 0x1e0   : > { %1314 = vpow2.f32 %v1063_v42 }
 0x1e9   : > { %v1313_v43 = vpop.eup %1312 }
 0x1ea   : > { %v1065_v44 = vadd.f32 1.0, %v1313_v43 }
 0x1ec   : > { %1316 = vrcp.f32 %v1065_v44 }
 0x1ed   : > { %v1315_v45 = vpop.eup %1314 }
 0x1ee   : > { %v1066_v46 = vadd.f32 1.0, %v1315_v45 }
 0x1f0   : > { %1318 = vrcp.f32 %v1066_v46 }
 0x1f2   : > { %v1052_v47 = vpop.f32.mrf.mxu0 }
 0x1f3   : > { %v1095_v48 = vsub.f32 0.0, %v1052_v47 }
 0x1f4   : > { %v1295_v49 = vpop.f32.mrf.mxu0 }
 0x1f5   : > { %v1097_v50 = vmul.f32 1.442695, %v1095_v48  ;;  %v1285_v51 = vpop.f32.mrf.mxu1 }
 0x1f6   : > { %v1073_v52 = vsub.f32 0.0, %v1285_v51  ;;  %v1055_v53 = vpop.f32.mrf.mxu0 }
 0x1f7   : > { %1320 = vpow2.f32 %v1097_v50  ;;  %v1096_v54 = vsub.f32 0.0, %v1055_v53  ;;  %v993_v55 = vpop.f32.mrf.mxu1 }
 0x1f8   : > { %v1079_v56 = vmul.f32 1.442695, %v1073_v52  ;;  %v1071_v57 = vsub.f32 0.0, %v993_v55  ;;  %v1296_v58 = vpop.f32.mrf.mxu0 }
 0x1f9   : > { %v1317_v59 = vpop.eup %1316  ;;  %v1099_v60 = vmul.f32 1.442695, %v1096_v54  ;;  %v1286_v61 = vpop.f32.mrf.mxu1 }
 0x1fa   : > { %1069 = vst [vmem:[%s1707_s9] sm:$0xff] %v1317_v59  ;;  %1322 = vpow2.f32 %v1079_v56  ;;  %v1075_v62 = vmul.f32 1.442695, %v1071_v57  ;;  %v1074_v63 = vsub.f32 0.0, %v1286_v61 }
 0x1fb   : > { %1324 = vpow2.f32 %v1099_v60  ;;  %v996_v0 = vpop.f32.mrf.mxu1 }
 0x1fc   : > { %1326 = vpow2.f32 %v1075_v62  ;;  %v1081_v1 = vmul.f32 1.442695, %v1074_v63  ;;  %v1072_v2 = vsub.f32 0.0, %v996_v0 }
 0x1fd   : > { %v1319_v3 = vpop.eup %1318 }
 0x1fe   : > { %1070 = vst [vmem:[%s1707_s9 + $0x8] sm:$0xff] %v1319_v3  ;;  %1328 = vpow2.f32 %v1081_v1  ;;  %v1077_v4 = vmul.f32 1.442695, %v1072_v2 }
 0x200   : > { %1330 = vpow2.f32 %v1077_v4 }
 0x204   : > { %v1321_v5 = vpop.eup %1320 }
 0x205   : > { %v1101_v6 = vadd.f32 1.0, %v1321_v5 }
 0x207   : > { %v1323_v7 = vpop.eup %1322  ;;  %1332 = vrcp.f32 %v1101_v6 }
 0x208   : > { %v1325_v8 = vpop.eup %1324  ;;  %v1085_v9 = vadd.f32 1.0, %v1323_v7 }
 0x209   : > { %v1327_v11 = vpop.eup %1326  ;;  %v1102_v12 = vadd.f32 1.0, %v1325_v8 }
 0x20a   : > { %1334 = vrcp.f32 %v1085_v9  ;;  %v1083_v13 = vadd.f32 1.0, %v1327_v11 }
 0x20b   : > { %v1329_v14 = vpop.eup %1328  ;;  %1336 = vrcp.f32 %v1102_v12 }
 0x20c   : > { %1338 = vrcp.f32 %v1083_v13  ;;  %v1086_v15 = vadd.f32 1.0, %v1329_v14 }
 0x20d   : > { %v1331_v16 = vpop.eup %1330 }
 0x20e   : > { %1340 = vrcp.f32 %v1086_v15  ;;  %v1084_v17 = vadd.f32 1.0, %v1331_v16 }
 0x210   : > { %1342 = vrcp.f32 %v1084_v17 }
 0x214   : > { %v1333_v18 = vpop.eup %1332 }
 0x215   : > { %1105 = vst [vmem:[%s1709_s11] sm:$0xff] %v1333_v18 }
 0x217   : > { %v1335_v19 = vpop.eup %1334 }
 0x218   : > { %v1337_v20 = vpop.eup %1336  ;;  %1093 = vst [vmem:[%s1708_s10 + $0x10] sm:$0xff] %v1335_v19 }
 0x219   : > { %v1339_v21 = vpop.eup %1338  ;;  %1106 = vst [vmem:[%s1709_s11 + $0x8] sm:$0xff] %v1337_v20 }
 0x21a   : > { %1091 = vst [vmem:[%s1708_s10] sm:$0xff] %v1339_v21 }
 0x21b   : > { %v1341_v22 = vpop.eup %1340 }
 0x21c   : > { %1094 = vst [vmem:[%s1708_s10 + $0x18] sm:$0xff] %v1341_v22 }
 0x21d   : > { %v1343_v23 = vpop.eup %1342 }
 0x21e   : > { %1092 = vst [vmem:[%s1708_s10 + $0x8] sm:$0xff] %v1343_v23 }
 0x21f PF: > { %s22_s17 = sadd.s32 1, %s1350_s17  }
 0x220   : > { %p19_p5 = scmp.ge.s32.totalorder %s22_s17, 4  }
 0x222   :  { %21 = sbr.rel (!%p19_p5) target bundleno = 1 (0x1), region = 108 }

</bundles_post_ra>
